<compile_context>
chip_gen: v6e
topology: v6e:2x2x1
jax: 0.10.0
libtpu: 0.0.40
codegen_flags: <defaults>
</compile_context>

<pallas_src>
import functools
import math

import jax
import jax.numpy as jnp
from jax.experimental import pallas as pl
from jax.experimental.pallas import tpu as pltpu

_LANE = 128
_SUBLANE = 8


def _diff_weight_fixmask_kernel(pre_ref, mask_ref, x_ref, o_ref, *, mask_is_float):
    pre = pre_ref[...]
    x = x_ref[...]
    if mask_is_float:
        upd = mask_ref[...] * x
    else:
        # bool / int fixmask: select instead of multiply (mask is 1 B/elem in HBM)
        upd = jnp.where(mask_ref[...] != 0, x, jnp.zeros_like(x))
    o_ref[...] = (pre + upd).astype(o_ref.dtype)


def _lane_dense_2d(total, orig_shape, max_tile_cols):
    """Pick a (rows, cols) factorization; prefer lane-dense cols (multiple of 128)."""
    for cols in (4096, 2048, 1024, 512, 256, _LANE):
        if cols <= max_tile_cols and total % cols == 0:
            return total // cols, cols
    # Fallback: keep the original trailing dim on the lane axis.
    if len(orig_shape) >= 2:
        return math.prod(orig_shape[:-1]), orig_shape[-1]
    return 1, orig_shape[0]


def _choose_tiles(rows, cols, itemsize_sum, *, max_tile_rows, max_tile_cols,
                  vmem_budget_bytes):
    """Largest (tile_rows, tile_cols) under the double-buffered VMEM budget."""
    # Column tile: either the full (possibly ragged) width, or a 128-multiple chunk.
    if cols <= max_tile_cols or cols % _LANE != 0:
        tc = cols
    else:
        tc = (max_tile_cols // _LANE) * _LANE
    # Row tile: 2 pipeline buffers x (3 inputs + 1 output) live in VMEM.
    per_row_bytes = max(1, tc * itemsize_sum)
    cap = max(_SUBLANE, vmem_budget_bytes // (2 * per_row_bytes))
    cap = min(cap, max_tile_rows)
    if rows <= cap:
        tr = rows          # block == full dim is always legal
    else:
        tr = max(_SUBLANE, (cap // _SUBLANE) * _SUBLANE)
    return tr, tc


def diff_weight_fixmask(pre_trained: jax.Array, mask: jax.Array, x: jax.Array,
                        *, max_tile_rows: int = 1024, max_tile_cols: int = 4096,
                        vmem_budget_bytes: int = 12 * 2**20) -> jax.Array:
    """Pallas implementation of DiffWeightFixmask.forward: pre_trained + mask * X."""
    assert pre_trained.shape == mask.shape == x.shape
    orig_shape = x.shape
    assert len(orig_shape) >= 1
    total = math.prod(orig_shape)

    rows, cols = _lane_dense_2d(total, orig_shape, max_tile_cols)

    pre2 = pre_trained.reshape(rows, cols)
    mask2 = mask.reshape(rows, cols)
    x2 = x.reshape(rows, cols)

    mask_is_float = bool(jnp.issubdtype(mask2.dtype, jnp.floating))
    if mask_is_float:
        out_dtype = jnp.result_type(pre2.dtype, mask2.dtype, x2.dtype)
    else:
        out_dtype = jnp.result_type(pre2.dtype, x2.dtype)

    itemsize_sum = (pre2.dtype.itemsize + mask2.dtype.itemsize
                    + x2.dtype.itemsize + jnp.dtype(out_dtype).itemsize)
    tr, tc = _choose_tiles(rows, cols, itemsize_sum,
                           max_tile_rows=max_tile_rows,
                           max_tile_cols=max_tile_cols,
                           vmem_budget_bytes=vmem_budget_bytes)

    grid = (pl.cdiv(rows, tr), pl.cdiv(cols, tc))
    spec = pl.BlockSpec((tr, tc), lambda i, j: (i, j))

    # Only raise the scoped-VMEM limit if the (rare) fallback layout forces a
    # block larger than the conservative budget (e.g. huge ragged last dim).
    est_vmem = 2 * tr * tc * itemsize_sum
    compiler_kwargs = dict(dimension_semantics=("parallel", "parallel"))
    if est_vmem > vmem_budget_bytes:
        compiler_kwargs["vmem_limit_bytes"] = min(est_vmem + (2 << 20), 60 * 2**20)

    cost = pl.CostEstimate(flops=2 * total, transcendentals=0,
                           bytes_accessed=total * itemsize_sum)

    out2 = pl.pallas_call(
        functools.partial(_diff_weight_fixmask_kernel, mask_is_float=mask_is_float),
        out_shape=jax.ShapeDtypeStruct((rows, cols), out_dtype),
        grid_spec=pltpu.PrefetchScalarGridSpec(
            num_scalar_prefetch=0,
            grid=grid,
            in_specs=[spec, spec, spec],
            out_specs=spec,
        ),
        compiler_params=pltpu.CompilerParams(**compiler_kwargs),
        cost_estimate=cost,
    )(pre2, mask2, x2)

    return out2.reshape(orig_shape)


if __name__ == "__main__":
    key = jax.random.PRNGKey(0)
    ks = jax.random.split(key, 9)

    # --- case 1: small linear weight (64, 128); bool fixmask, ~30% kept.
    OUT, IN = 64, 128
    pre_a = jax.random.normal(ks[0], (OUT, IN), dtype=jnp.float32)
    mask_a = jax.random.uniform(ks[1], (OUT, IN)) < 0.3          # bool mask
    x_a = jax.random.normal(ks[2], (OUT, IN), dtype=jnp.float32)
    out_a = jax.block_until_ready(diff_weight_fixmask(pre_a, mask_a, x_a))
    ref_a = pre_a + mask_a.astype(jnp.float32) * x_a
    assert out_a.dtype == ref_a.dtype
    assert jnp.allclose(out_a, ref_a, atol=1e-6, rtol=1e-6)

    # --- case 2: ragged row count + multi-block grid (exercises cdiv / partial
    #     last tile) with a float mask; row tile cap forced small on purpose.
    R2, C2 = 80, 256
    pre_b = jax.random.normal(ks[3], (R2, C2), dtype=jnp.float32)
    mask_b = (jax.random.uniform(ks[4], (R2, C2)) < 0.5).astype(jnp.float32)
    x_b = jax.random.normal(ks[5], (R2, C2), dtype=jnp.float32)
    out_b = jax.block_until_ready(
        diff_weight_fixmask(pre_b, mask_b, x_b, max_tile_rows=32, max_tile_cols=256))
    ref_b = pre_b + mask_b * x_b
    assert jnp.allclose(out_b, ref_b, atol=1e-6, rtol=1e-6)

    # --- case 3: 4D parameter with a tiny trailing dim (exercises lane-dense
    #     repacking) and mixed precision (f32 pre_trained + bf16 diff).
    shp = (2, 4, 16, 16)
    pre_c = jax.random.normal(ks[6], shp, dtype=jnp.float32)
    mask_c = jax.random.uniform(ks[7], shp) < 0.5                 # bool mask
    x_c = jax.random.normal(ks[8], shp, dtype=jnp.bfloat16)
    out_c = jax.block_until_ready(diff_weight_fixmask(pre_c, mask_c, x_c))
    ref_c = pre_c + jnp.where(mask_c, x_c.astype(jnp.float32), 0.0)
    assert out_c.dtype == jnp.float32
    assert jnp.allclose(out_c, ref_c, atol=1e-2, rtol=1e-2)

    print("KERNEL_OK")
</pallas_src>

<mosaic_0001>
module attributes {stable_mosaic.version = 11 : i64} {
  func.func @_diff_weight_fixmask_kernel(%arg0: i32, %arg1: i32, %arg2: memref<2x4096xf32, #tpu.memory_space<vmem>>, %arg3: memref<2x4096xi32, #tpu.memory_space<vmem>>, %arg4: memref<2x4096xf32, #tpu.memory_space<vmem>>, %arg5: memref<2x4096xf32, #tpu.memory_space<vmem>>) attributes {dimension_semantics = [#tpu.dimension_semantics<parallel>, #tpu.dimension_semantics<parallel>], iteration_bounds = array<i64: 1, 1>, scalar_prefetch = 0 : i64, scratch_operands = 0 : i64, tpu.core_type = #tpu.core_type<tc>, window_params = [{transform_indices = @transform_0, window_bounds = array<i64: 2, 4096>}, {transform_indices = @transform_1, window_bounds = array<i64: 2, 4096>}, {transform_indices = @transform_2, window_bounds = array<i64: 2, 4096>}, {transform_indices = @transform_3, window_bounds = array<i64: 2, 4096>}]} {
    %c0 = arith.constant 0 : index
    %c0_0 = arith.constant 0 : index
    %0 = vector.load %arg2[%c0, %c0_0] : memref<2x4096xf32, #tpu.memory_space<vmem>>, vector<2x4096xf32>
    %c0_1 = arith.constant 0 : index
    %c0_2 = arith.constant 0 : index
    %1 = vector.load %arg4[%c0_1, %c0_2] : memref<2x4096xf32, #tpu.memory_space<vmem>>, vector<2x4096xf32>
    %c0_3 = arith.constant 0 : index
    %c0_4 = arith.constant 0 : index
    %2 = vector.load %arg3[%c0_3, %c0_4] : memref<2x4096xi32, #tpu.memory_space<vmem>>, vector<2x4096xi32>
    %cst = arith.constant dense<0> : vector<2x4096xi32>
    %3 = arith.cmpi ne, %2, %cst : vector<2x4096xi32>
    %4 = arith.extui %3 : vector<2x4096xi1> to vector<2x4096xi32>
    %c0_i32 = arith.constant 0 : i32
    %5 = vector.broadcast %c0_i32 : i32 to vector<2x4096xi32>
    %6 = arith.cmpi ne, %4, %5 : vector<2x4096xi32>
    %cst_5 = arith.constant 0.000000e+00 : f32
    %7 = vector.broadcast %cst_5 : f32 to vector<2x4096xf32>
    %8 = arith.select %6, %1, %7 : vector<2x4096xi1>, vector<2x4096xf32>
    %9 = arith.addf %0, %8 : vector<2x4096xf32>
    %c0_6 = arith.constant 0 : index
    %c0_7 = arith.constant 0 : index
    %10 = vector.load %arg5[%c0_6, %c0_7] : memref<2x4096xf32, #tpu.memory_space<vmem>>, vector<2x4096xf32>
    tpu.vector_store %arg5[%c0_6, %c0_7], %9 {strides = array<i32>} : memref<2x4096xf32, #tpu.memory_space<vmem>>, vector<2x4096xf32>,
    return
  }
  func.func @transform_0(%arg0: i32, %arg1: i32) -> (i32, i32) {
    %c0_i32 = arith.constant 0 : i32
    return %arg0, %arg1 : i32, i32
  }
  func.func @transform_1(%arg0: i32, %arg1: i32) -> (i32, i32) {
    %c0_i32 = arith.constant 0 : i32
    return %arg0, %arg1 : i32, i32
  }
  func.func @transform_2(%arg0: i32, %arg1: i32) -> (i32, i32) {
    %c0_i32 = arith.constant 0 : i32
    return %arg0, %arg1 : i32, i32
  }
  func.func @transform_3(%arg0: i32, %arg1: i32) -> (i32, i32) {
    %c0_i32 = arith.constant 0 : i32
    return %arg0, %arg1 : i32, i32
  }
}

</mosaic_0001>

<bundles_post_ra>
// kernel: tpu_custom_call.1
= control target key start
LH: loop header
LB: loop body
LE: loop exit
PB: predicated region body
PF: predicated region fallthrough
CT: control target
= control target key end

     0   :  { %8 = vsyncpa [#allocation3], 0  ;;  %s220_s0 = inlined_call_operand.vmem [shape: f32[2,4096], index: 0, kind: input, shape index: {}]   ;;  %s221_s1 = inlined_call_operand.vmem [shape: s32[2,4096], index: 1, kind: input, shape index: {}]   ;;  %s222_s2 = inlined_call_operand.hbm [shape: f32[2,4096], index: 2, kind: input, shape index: {}]   ;;  %s223_s3 = inlined_call_operand.hbm [shape: f32[2,4096], index: 3, kind: output, shape index: {}]  }
   0x1   :  { %9 = vsyncpa [#allocation4], 0  ;;  %s144_s12 = smov [#allocation2]  }
   0x2   :  { %s20_s13 = sshll.u32 %s144_s12, 4  ;;  %s21_s13 = int_to_ptr.vmem [resolvable:$true] %s20_s13 }
   0x3   :  { %s108_s14 = scalar_lea.vmem %s21_s13, 1024  ;;  %p113_p1 = scmp.lt.s32.totalorder %s21_s13, %s21_s13 }
   0x4   :  { %p109_p0 = scmp.ne.s32.totalorder %s21_s13, %s108_s14  ;;  %p114_p2 = scmp.lt.s32.totalorder %s108_s14, %s108_s14 }
   0x6   :  { %p115_p3 = por %p114_p2, %p113_p1 }
   0x8   :  { %p116_p4 = pnand %p115_p3, %p109_p0 }
   0xa   :  { %119 = shalt.err (!%p116_p4)
}
   0xb   :  { %23 = dma.hbm_to_vmem [thread:$0]  %s222_s2, 1024, %s21_s13, [#allocation3]  }
   0xc   :  { %140 = dma.done.wait [#allocation3], 1024  }
   0xd   :  { %141 = vsyncadd [#allocation3], 4294966272  ;;  %v27_v0 = vld [vmem:[%s220_s0] sm:$0xff]  ;;  %v28_v3 = vld [vmem:[%s220_s0 + $0x8] sm:$0xff]  ;;  %s145_s21 = smov [#allocation5]  }
   0xe   :  { %v35_v1 = vld [vmem:[#allocation2] sm:$0xff]  ;;  %v36_v4 = vld [vmem:[#allocation2 + $0x8] sm:$0xff]  ;;  %v29_v7 = vld [vmem:[%s220_s0 + $0x10] sm:$0xff]  ;;  %s89_s22 = sshll.u32 %s145_s21, 4  ;;  %s90_s22 = int_to_ptr.vmem [resolvable:$true] %s89_s22 }
   0xf   :  { %v43_v2 = vld [vmem:[%s221_s1] sm:$0xff]  ;;  %v44_v5 = vld [vmem:[%s221_s1 + $0x8] sm:$0xff]  ;;  %v37_v8 = vld [vmem:[#allocation2 + $0x10] sm:$0xff]  ;;  %p125_p6 = scmp.lt.s32.totalorder %s90_s22, %s90_s22 }
  0x10   :  { %vm51_vm0 = vcmp.ne.s32.totalorder %v43_v2, 0  ;;  %vm52_vm1 = vcmp.ne.s32.totalorder %v44_v5, 0  ;;  %v45_v9 = vld [vmem:[%s221_s1 + $0x10] sm:$0xff]  ;;  %v30_v12 = vld [vmem:[%s220_s0 + $0x18] sm:$0xff]  ;;  %v31_v17 = vld [vmem:[%s220_s0 + $0x20] sm:$0xff] }
  0x11   :  { %v59_v6 = vsel %vm51_vm0, %v35_v1, 0.0  ;;  %v60_v11 = vsel %vm52_vm1, %v36_v4, 0.0  ;;  %vm53_vm2 = vcmp.ne.s32.totalorder %v45_v9, 0  ;;  %v38_v13 = vld [vmem:[#allocation2 + $0x18] sm:$0xff]  ;;  %v39_v18 = vld [vmem:[#allocation2 + $0x20] sm:$0xff]  ;;  %v32_v22 = vld [vmem:[%s220_s0 + $0x28] sm:$0xff] }
  0x12   :  { %v67_v10 = vadd.f32 %v59_v6, %v27_v0  ;;  %v46_v14 = vld [vmem:[%s221_s1 + $0x18] sm:$0xff]  ;;  %v68_v15 = vadd.f32 %v60_v11, %v28_v3  ;;  %v61_v16 = vsel %vm53_vm2, %v37_v8, 0.0  ;;  %v47_v19 = vld [vmem:[%s221_s1 + $0x20] sm:$0xff]  ;;  %v40_v23 = vld [vmem:[#allocation2 + $0x28] sm:$0xff] }
  0x13   :  { %vm54_vm3 = vcmp.ne.s32.totalorder %v46_v14, 0  ;;  %v69_v20 = vadd.f32 %v61_v16, %v29_v7  ;;  %vm55_vm4 = vcmp.ne.s32.totalorder %v47_v19, 0  ;;  %v48_v24 = vld [vmem:[%s221_s1 + $0x28] sm:$0xff]  ;;  %v33_v27 = vld [vmem:[%s220_s0 + $0x30] sm:$0xff]  ;;  %v34_v32 = vld [vmem:[%s220_s0 + $0x38] sm:$0xff]  ;;  %s120_s0 = scalar_lea.vmem %s90_s22, 1024 }
  0x14   :  { %75 = vst [vmem:[#allocation5] sm:$0xff] %v67_v10  ;;  %v62_v21 = vsel %vm54_vm3, %v38_v13, 0.0  ;;  %76 = vst [vmem:[#allocation5 + $0x8] sm:$0xff] %v68_v15  ;;  %v63_v26 = vsel %vm55_vm4, %v39_v18, 0.0  ;;  %vm56_vm5 = vcmp.ne.s32.totalorder %v48_v24, 0  ;;  %v41_v28 = vld [vmem:[#allocation2 + $0x30] sm:$0xff]  ;;  %p121_p5 = scmp.ne.s32.totalorder %s90_s22, %s120_s0  ;;  %p126_p7 = scmp.lt.s32.totalorder %s120_s0, %s120_s0 }
  0x15   :  { %v70_v25 = vadd.f32 %v62_v21, %v30_v12  ;;  %v49_v29 = vld [vmem:[%s221_s1 + $0x30] sm:$0xff]  ;;  %77 = vst [vmem:[#allocation5 + $0x10] sm:$0xff] %v69_v20  ;;  %v71_v30 = vadd.f32 %v63_v26, %v31_v17  ;;  %v64_v31 = vsel %vm56_vm5, %v40_v23, 0.0  ;;  %v42_v33 = vld [vmem:[#allocation2 + $0x38] sm:$0xff] }
  0x16   :  { %vm57_vm6 = vcmp.ne.s32.totalorder %v49_v29, 0  ;;  %v50_v34 = vld [vmem:[%s221_s1 + $0x38] sm:$0xff]  ;;  %v72_v35 = vadd.f32 %v64_v31, %v32_v22  ;;  %p127_p8 = por %p126_p7, %p125_p6 }
  0x17   :  { %78 = vst [vmem:[#allocation5 + $0x18] sm:$0xff] %v70_v25  ;;  %v65_v36 = vsel %vm57_vm6, %v41_v28, 0.0  ;;  %vm58_vm7 = vcmp.ne.s32.totalorder %v50_v34, 0  ;;  %79 = vst [vmem:[#allocation5 + $0x20] sm:$0xff] %v71_v30 }
  0x18   :  { %v73_v37 = vadd.f32 %v65_v36, %v33_v27  ;;  %v66_v38 = vsel %vm58_vm7, %v42_v33, 0.0  ;;  %80 = vst [vmem:[#allocation5 + $0x28] sm:$0xff] %v72_v35  ;;  %p128_p9 = pnand %p127_p8, %p121_p5 }
  0x19   :  { %v74_v39 = vadd.f32 %v66_v38, %v34_v32 }
  0x1a   :  { %81 = vst [vmem:[#allocation5 + $0x30] sm:$0xff] %v73_v37 }
  0x1b   :  { %82 = vst [vmem:[#allocation5 + $0x38] sm:$0xff] %v74_v39 }
  0x1c   :  { %131 = shalt.err (!%p128_p9)
}
  0x1d   :  { %92 = dma.vmem_to_hbm [thread:$0]  %s90_s22, 1024, %s223_s3, [#allocation4]  }
  0x1e   :  { %142 = dma.done.wait [#allocation4], 1024  }
  0x1f   :  { %143 = vsyncadd [#allocation4], 4294966272 }
  0x20   :  { %96 = vsyncpa [#allocation3], 1 }
  0x21   :  { %97 = vsyncpa [#allocation4], 1 }

</bundles_post_ra>
